<compile_context>
chip_gen: v7x
topology: tpu7x:2x2x1
jax: 0.10.0
libtpu: 0.0.40
codegen_flags: <defaults>
</compile_context>

<pallas_src>
import functools

import jax
import jax.numpy as jnp
from jax.experimental import pallas as pl
from jax.experimental.pallas import tpu as pltpu


def _round_up(x: int, m: int) -> int:
    return ((x + m - 1) // m) * m


def _choose_batch_tile(B: int, block_b: int) -> int:
    """Batch tile: multiple of 8, large (amortize per-step overhead), and
    yielding >= 2 grid steps when B > 8 so v7x's 2 TensorCores both get work."""
    if B <= 8:
        # Single full-extent block (dims equal to the array are exempt from
        # the (8,128) rule).  Too small for multi-tile sharding to matter.
        return B
    tb = _round_up(min(block_b, _round_up(B, 8)), 8)
    if tb >= B:
        # Would give a 1-step grid: split roughly in half instead.
        tb = max(8, _round_up(pl.cdiv(B, 2), 8))
    return tb


def _backbone_kernel(x_ref, w1_ref, b1_ref, w2_ref, b2_ref, o_ref):
    # ReLU in the input's native dtype, then cast to the MXU compute dtype
    # in VMEM (rounding is monotone around 0, so ReLU-then-cast == cast-then-ReLU).
    x = jnp.maximum(x_ref[...], 0.0).astype(w1_ref.dtype)
    # Linear 1: MXU matmul with f32 accumulation; bias-add + ReLU in f32.
    h = jnp.dot(x, w1_ref[...], preferred_element_type=jnp.float32) + b1_ref[...]
    h = jnp.maximum(h, 0.0).astype(w2_ref.dtype)
    # Linear 2: f32 accumulate, bias-add + ReLU in f32, cast on store.
    y = jnp.dot(h, w2_ref[...], preferred_element_type=jnp.float32) + b2_ref[...]
    o_ref[...] = jnp.maximum(y, 0.0).astype(o_ref.dtype)


def impossibly_good_backbone(
    x, w1, b1, w2, b2,
    *,
    block_b: int = 2048,
    compute_dtype=jnp.bfloat16,
    out_dtype=None,
):
    """Fused forward pass of ImpossiblyGoodBackbone.

    x  : [B, Cin]  (any float dtype; streamed in native dtype, cast in-kernel)
    w1 : [Cin, H]  (already transposed from PyTorch [H, Cin])
    b1 : [H]
    w2 : [H, H]    (already transposed)
    b2 : [H]
    Returns [B, H] in `out_dtype` (defaults to bf16 if compute_dtype is bf16,
    else x.dtype).  MXU accumulation is always f32; bias-add/ReLU are f32.
    """
    B, Cin = x.shape
    H = w1.shape[1]
    compute_dtype = jnp.dtype(compute_dtype)
    if out_dtype is None:
        # bf16 output halves the dominant HBM write stream when using bf16 MXU.
        out_dtype = compute_dtype if compute_dtype == jnp.dtype(jnp.bfloat16) else x.dtype
    out_dtype = jnp.dtype(out_dtype)

    # --- hardware-friendly sizes --------------------------------------------
    Hp = _round_up(H, 128)                 # lane-dense hidden dim (weights only)
    TB = _choose_batch_tile(B, block_b)    # batch tile (multiple of 8 or == B)
    grid = (pl.cdiv(B, TB),)               # partial last block handled by Pallas

    # Pad only the (small) weights/biases on the hidden dim; x is NOT padded.
    if Hp != H:
        w1 = jnp.pad(w1, ((0, 0), (0, Hp - H)))
        b1 = jnp.pad(b1, ((0, Hp - H),))
        w2 = jnp.pad(w2, ((0, Hp - H), (0, Hp - H)))
        b2 = jnp.pad(b2, ((0, Hp - H),))
    # TODO(synk): if Cin >= 64 and not a multiple of 128, pre-pad the feature
    # dim to 128 once upstream (not per call) for lane-dense x loads.

    w1c = w1.astype(compute_dtype)
    w2c = w2.astype(compute_dtype)
    b1r = b1.reshape(1, Hp).astype(jnp.float32)
    b2r = b2.reshape(1, Hp).astype(jnp.float32)

    # --- VMEM budget / cost estimate ----------------------------------------
    x_bytes_vmem = 2 * TB * Cin * x.dtype.itemsize           # double-buffered
    o_bytes_vmem = 2 * TB * Hp * out_dtype.itemsize          # double-buffered
    w_bytes_vmem = (Cin * Hp + Hp * Hp) * compute_dtype.itemsize  # single-buffered
    b_bytes_vmem = 2 * Hp * 4
    vmem_needed = x_bytes_vmem + o_bytes_vmem + w_bytes_vmem + b_bytes_vmem
    vmem_limit = int(min(64 << 20, max(32 << 20, int(vmem_needed * 1.5) + (2 << 20))))

    cost = pl.CostEstimate(
        flops=2 * B * Hp * (Cin + Hp),
        transcendentals=0,
        bytes_accessed=(B * Cin * x.dtype.itemsize
                        + B * Hp * out_dtype.itemsize
                        + (Cin * Hp + Hp * Hp) * compute_dtype.itemsize
                        + 2 * Hp * 4),
    )

    resident = pl.Buffered(1)  # constant index_map -> no re-fetch, 1 VMEM copy

    out = pl.pallas_call(
        _backbone_kernel,
        out_shape=jax.ShapeDtypeStruct((B, Hp), out_dtype),
        grid_spec=pltpu.PrefetchScalarGridSpec(
            num_scalar_prefetch=0,
            grid=grid,
            in_specs=[
                # x: streamed per batch tile in its native dtype.
                pl.BlockSpec((TB, Cin), lambda i: (i, 0)),
                # Weights / biases: fetched once, resident across the grid.
                pl.BlockSpec((Cin, Hp), lambda i: (0, 0), pipeline_mode=resident),
                pl.BlockSpec((1, Hp), lambda i: (0, 0), pipeline_mode=resident),
                pl.BlockSpec((Hp, Hp), lambda i: (0, 0), pipeline_mode=resident),
                pl.BlockSpec((1, Hp), lambda i: (0, 0), pipeline_mode=resident),
            ],
            out_specs=pl.BlockSpec((TB, Hp), lambda i: (i, 0)),
        ),
        compiler_params=pltpu.CompilerParams(
            # Batch tiles are independent -> shard across v7x's 2 TensorCores.
            dimension_semantics=("parallel",),
            vmem_limit_bytes=vmem_limit,
        ),
        cost_estimate=cost,
    )(x, w1c, b1r, w2c, b2r)

    # With the module default H=256 (multiple of 128) this is a no-op.
    return out if Hp == H else out[:, :H]


def reference(x, w1, b1, w2, b2):
    x = jnp.maximum(x, 0.0)
    h = jnp.maximum(x @ w1 + b1, 0.0)
    return jnp.maximum(h @ w2 + b2, 0.0)


if __name__ == "__main__":
    B = 2      # batch
    Cin = 4    # in_channels
    H = 32     # hidden_channels (small test size; module default is 256)

    key = jax.random.PRNGKey(0)
    kx, k1, kb1, k2, kb2, kx2 = jax.random.split(key, 6)

    x = jax.random.normal(kx, (B, Cin), dtype=jnp.float32)
    # PyTorch-style Linear weight shapes: [out, in]; transpose for the kernel.
    w1_pt = jax.random.normal(k1, (H, Cin), dtype=jnp.float32) * 0.1
    b1 = jax.random.normal(kb1, (H,), dtype=jnp.float32) * 0.1
    w2_pt = jax.random.normal(k2, (H, H), dtype=jnp.float32) * 0.1
    b2 = jax.random.normal(kb2, (H,), dtype=jnp.float32) * 0.1
    w1 = w1_pt.T
    w2 = w2_pt.T

    ref = reference(x, w1, b1, w2, b2)

    # f32 compute path: exact check against the f32 reference.
    fwd_f32 = jax.jit(functools.partial(
        impossibly_good_backbone, compute_dtype=jnp.float32,
        out_dtype=jnp.float32))
    out_f32 = jax.block_until_ready(fwd_f32(x, w1, b1, w2, b2))
    assert out_f32.shape == (B, H)
    assert jnp.allclose(out_f32, ref, atol=1e-5, rtol=1e-5), "f32 mismatch"

    # bf16 MXU-input path (production default): bf16 output, looser tolerance.
    fwd_bf16 = jax.jit(functools.partial(impossibly_good_backbone))
    out_bf16 = jax.block_until_ready(fwd_bf16(x, w1, b1, w2, b2))
    assert out_bf16.shape == (B, H)
    assert out_bf16.dtype == jnp.dtype(jnp.bfloat16)
    assert jnp.allclose(out_bf16.astype(jnp.float32), ref,
                        atol=3e-2, rtol=3e-2), "bf16 mismatch"

    # Unaligned batch: exercises the multi-step grid and the masked partial
    # last block (no wrapper-side pad of x, no row slice of the output).
    B2 = 30
    x2 = jax.random.normal(kx2, (B2, Cin), dtype=jnp.float32)
    ref2 = reference(x2, w1, b1, w2, b2)
    fwd_part = jax.jit(functools.partial(
        impossibly_good_backbone, block_b=16,
        compute_dtype=jnp.float32, out_dtype=jnp.float32))
    out2 = jax.block_until_ready(fwd_part(x2, w1, b1, w2, b2))
    assert out2.shape == (B2, H)
    assert jnp.allclose(out2, ref2, atol=1e-5, rtol=1e-5), "partial-block mismatch"

    print("KERNEL_OK")
</pallas_src>

<mosaic_0001>
module attributes {stable_mosaic.version = 11 : i64} {
  func.func @_backbone_kernel(%arg0: i32, %arg1: memref<2x4xf32, #tpu.memory_space<vmem>>, %arg2: memref<4x128xf32, #tpu.memory_space<vmem>>, %arg3: memref<1x128xf32, #tpu.memory_space<vmem>>, %arg4: memref<128x128xf32, #tpu.memory_space<vmem>>, %arg5: memref<1x128xf32, #tpu.memory_space<vmem>>, %arg6: memref<2x128xf32, #tpu.memory_space<vmem>>) attributes {dimension_semantics = [#tpu.dimension_semantics<parallel>], iteration_bounds = array<i64: 1>, scalar_prefetch = 0 : i64, scratch_operands = 0 : i64, tpu.core_type = #tpu.core_type<tc>, window_params = [{transform_indices = @transform_0, window_bounds = array<i64: 2, 4>}, {pipeline_mode = #tpu.pipeline_mode<synchronous>, transform_indices = @transform_1, window_bounds = array<i64: 4, 128>}, {pipeline_mode = #tpu.pipeline_mode<synchronous>, transform_indices = @transform_2, window_bounds = array<i64: 1, 128>}, {pipeline_mode = #tpu.pipeline_mode<synchronous>, transform_indices = @transform_3, window_bounds = array<i64: 128, 128>}, {pipeline_mode = #tpu.pipeline_mode<synchronous>, transform_indices = @transform_4, window_bounds = array<i64: 1, 128>}, {transform_indices = @transform_5, window_bounds = array<i64: 2, 128>}]} {
    %c0 = arith.constant 0 : index
    %c0_0 = arith.constant 0 : index
    %0 = vector.load %arg1[%c0, %c0_0] : memref<2x4xf32, #tpu.memory_space<vmem>>, vector<2x4xf32>
    %cst = arith.constant 0.000000e+00 : f32
    %1 = vector.broadcast %cst : f32 to vector<2x4xf32>
    %2 = arith.maximumf %0, %1 : vector<2x4xf32>
    %c0_1 = arith.constant 0 : index
    %c0_2 = arith.constant 0 : index
    %3 = vector.load %arg2[%c0_1, %c0_2] : memref<4x128xf32, #tpu.memory_space<vmem>>, vector<4x128xf32>
    %cst_3 = arith.constant dense<0.000000e+00> : vector<2x128xf32>
    %4 = tpu.matmul %2, %3, %cst_3 {dimension_numbers = #tpu.dot_dimension_numbers<[1], [0], [0], [1], [0, 0, 1, 1], [], []>} : vector<2x4xf32>, vector<4x128xf32>, vector<2x128xf32> -> vector<2x128xf32>
    %c0_4 = arith.constant 0 : index
    %c0_5 = arith.constant 0 : index
    %5 = vector.load %arg3[%c0_4, %c0_5] : memref<1x128xf32, #tpu.memory_space<vmem>>, vector<1x128xf32>
    %6 = vector.broadcast %5 : vector<1x128xf32> to vector<2x128xf32>
    %7 = arith.addf %4, %6 : vector<2x128xf32>
    %cst_6 = arith.constant 0.000000e+00 : f32
    %8 = vector.broadcast %cst_6 : f32 to vector<2x128xf32>
    %9 = arith.maximumf %7, %8 : vector<2x128xf32>
    %c0_7 = arith.constant 0 : index
    %c0_8 = arith.constant 0 : index
    %10 = vector.load %arg4[%c0_7, %c0_8] : memref<128x128xf32, #tpu.memory_space<vmem>>, vector<128x128xf32>
    %cst_9 = arith.constant dense<0.000000e+00> : vector<2x128xf32>
    %11 = tpu.matmul %9, %10, %cst_9 {dimension_numbers = #tpu.dot_dimension_numbers<[1], [0], [0], [1], [0, 0, 1, 1], [], []>} : vector<2x128xf32>, vector<128x128xf32>, vector<2x128xf32> -> vector<2x128xf32>
    %c0_10 = arith.constant 0 : index
    %c0_11 = arith.constant 0 : index
    %12 = vector.load %arg5[%c0_10, %c0_11] : memref<1x128xf32, #tpu.memory_space<vmem>>, vector<1x128xf32>
    %13 = vector.broadcast %12 : vector<1x128xf32> to vector<2x128xf32>
    %14 = arith.addf %11, %13 : vector<2x128xf32>
    %cst_12 = arith.constant 0.000000e+00 : f32
    %15 = vector.broadcast %cst_12 : f32 to vector<2x128xf32>
    %16 = arith.maximumf %14, %15 : vector<2x128xf32>
    %c0_13 = arith.constant 0 : index
    %c0_14 = arith.constant 0 : index
    %17 = vector.load %arg6[%c0_13, %c0_14] : memref<2x128xf32, #tpu.memory_space<vmem>>, vector<2x128xf32>
    tpu.vector_store %arg6[%c0_13, %c0_14], %16 {strides = array<i32>} : memref<2x128xf32, #tpu.memory_space<vmem>>, vector<2x128xf32>,
    return
  }
  func.func @transform_0(%arg0: i32) -> (i32, i32) {
    %c0_i32 = arith.constant 0 : i32
    %c0_i32_0 = arith.constant 0 : i32
    return %arg0, %c0_i32 : i32, i32
  }
  func.func @transform_1(%arg0: i32) -> (i32, i32) {
    %c0_i32 = arith.constant 0 : i32
    %c0_i32_0 = arith.constant 0 : i32
    %c0_i32_1 = arith.constant 0 : i32
    return %c0_i32, %c0_i32_0 : i32, i32
  }
  func.func @transform_2(%arg0: i32) -> (i32, i32) {
    %c0_i32 = arith.constant 0 : i32
    %c0_i32_0 = arith.constant 0 : i32
    %c0_i32_1 = arith.constant 0 : i32
    return %c0_i32, %c0_i32_0 : i32, i32
  }
  func.func @transform_3(%arg0: i32) -> (i32, i32) {
    %c0_i32 = arith.constant 0 : i32
    %c0_i32_0 = arith.constant 0 : i32
    %c0_i32_1 = arith.constant 0 : i32
    return %c0_i32, %c0_i32_0 : i32, i32
  }
  func.func @transform_4(%arg0: i32) -> (i32, i32) {
    %c0_i32 = arith.constant 0 : i32
    %c0_i32_0 = arith.constant 0 : i32
    %c0_i32_1 = arith.constant 0 : i32
    return %c0_i32, %c0_i32_0 : i32, i32
  }
  func.func @transform_5(%arg0: i32) -> (i32, i32) {
    %c0_i32 = arith.constant 0 : i32
    %c0_i32_0 = arith.constant 0 : i32
    return %arg0, %c0_i32 : i32, i32
  }
}

</mosaic_0001>

<bundles_post_ra>
// kernel: impossibly_good_backbone.1
= control target key start
LH: loop header
LB: loop body
LE: loop exit
PB: predicated region body
PF: predicated region fallthrough
CT: control target
= control target key end

     0   :  { %vm35_vm0 = vcmask 1043456   ;;  %v334_v1 = vmov 0.0   ;;  %vm335_vm1 = vmmov 0   ;;  %vm31_vm2 = vcmask 31744   ;;  %s440_s0 = inlined_call_operand.vmem [shape: f32[2,4], index: 0, kind: input, shape index: {}]   ;;  %s441_s1 = inlined_call_operand.vmem [shape: f32[4,128], index: 1, kind: input, shape index: {}]   ;;  %s442_s2 = inlined_call_operand.vmem [shape: f32[1,128], index: 2, kind: input, shape index: {}]   ;;  %s443_s3 = inlined_call_operand.vmem [shape: f32[128,128], index: 3, kind: input, shape index: {}]   ;;  %s444_s4 = inlined_call_operand.vmem [shape: f32[1,128], index: 4, kind: input, shape index: {}]   ;;  %s445_s5 = inlined_call_operand.hbm [shape: f32[2,128], index: 5, kind: output, shape index: {}]  }
   0x1   :  { %v23_v0 = vld [vmem:[%s441_s1] sm:$0xf]  ;;  %242 = vmatprep.subr.mxu0 %v334_v1  ;;  %244 = vmatprep.mubr.msk.f32.mxu0 %vm335_vm1, %v334_v1  ;;  %v111_v4 = vld [vmem:[%s443_s3 + $0x8] sm:$0xff]  ;;  %v336_v6 = vmov 0.0|0.0   ;;  %v112_v8 = vld [vmem:[%s443_s3 + $0x10] sm:$0xff] }
   0x2   :  { %v21_v2 = vld [vmem:[%s440_s0] sm:$0x3]  ;;  %243 = vmatpush3.msk.msra.mxu0 %vm35_vm0, %v23_v0  ;;  %282 = vmatprep.subr.bf16.mxu1 %v336_v6  ;;  %v113_v9 = vld [vmem:[%s443_s3 + $0x18] sm:$0xff]  ;;  %v115_v12 = vld [vmem:[%s443_s3 + $0x28] sm:$0xff] }
   0x3   :  { %v110_v3 = vld [vmem:[%s443_s3] sm:$0xff]  ;;  %v22_v5 = vmax.f32 %v21_v2, 0.0  ;;  %279 = vmatprep.mubr.msk.f32.mxu1 %vm335_vm1, %v334_v1  ;;  %v286_v10 = vpack.c.bf16 %v113_v9, %v112_v8 }
   0x4   :  { %v283_v7 = vpack.c.bf16 %v111_v4, %v110_v3  ;;  %v114_v11 = vld [vmem:[%s443_s3 + $0x20] sm:$0xff] }
   0x5   :  { %245 = vmatmul.mubr.msk.f32.vlgmr.msra.gmra.mrb[0].mxu0 %vm31_vm2, %v22_v5 }
   0x6   :  { %284 = vmatpush3.bf16.msra.mxu1 %v283_v7 }
   0x7   :  { %285 = vmatprep.subr.bf16.mxu1 %v336_v6 }
   0x8   :  { %10 = vsyncpa [#allocation3], 0  ;;  %v289_v13 = vpack.c.bf16 %v115_v12, %v114_v11  ;;  %v116_v14 = vld [vmem:[%s443_s3 + $0x30] sm:$0xff]  ;;  %v117_v15 = vld [vmem:[%s443_s3 + $0x38] sm:$0xff]  ;;  %s337_s29 = smov [#allocation2]  }
   0x9   :  { %v292_v16 = vpack.c.bf16 %v117_v15, %v116_v14  ;;  %v118_v17 = vld [vmem:[%s443_s3 + $0x40] sm:$0xff]  ;;  %v119_v18 = vld [vmem:[%s443_s3 + $0x48] sm:$0xff]  ;;  %v120_v20 = vld [vmem:[%s443_s3 + $0x50] sm:$0xff]  ;;  %s211_s30 = sshll.u32 %s337_s29, 4  ;;  %s212_s30 = int_to_ptr.vmem [resolvable:$true] %s211_s30 }
   0xa   :  { %287 = vmatpush3.bf16.msra.mxu1 %v286_v10  ;;  %v295_v19 = vpack.c.bf16 %v119_v18, %v118_v17  ;;  %v121_v21 = vld [vmem:[%s443_s3 + $0x58] sm:$0xff]  ;;  %v122_v23 = vld [vmem:[%s443_s3 + $0x60] sm:$0xff]  ;;  %v123_v24 = vld [vmem:[%s443_s3 + $0x68] sm:$0xff]  ;;  %p315_p1 = scmp.lt.s32.totalorder %s212_s30, %s212_s30 }
   0xb   :  { %288 = vmatprep.subr.bf16.mxu1 %v336_v6  ;;  %v298_v22 = vpack.c.bf16 %v121_v21, %v120_v20  ;;  %v301_v25 = vpack.c.bf16 %v123_v24, %v122_v23  ;;  %v124_v26 = vld [vmem:[%s443_s3 + $0x70] sm:$0xff]  ;;  %v125_v27 = vld [vmem:[%s443_s3 + $0x78] sm:$0xff]  ;;  %v219_v29 = vld [vmem:[%s442_s2] ss:$0 sm:$0xff]  ;;  %s310_s3 = scalar_lea.vmem %s212_s30, 32 }
   0xc   :  { %v304_v28 = vpack.c.bf16 %v125_v27, %v124_v26  ;;  %v222_v34 = vld [vmem:[%s444_s4] ss:$0 sm:$0xff]  ;;  %p311_p0 = scmp.ne.s32.totalorder %s212_s30, %s310_s3  ;;  %p316_p2 = scmp.lt.s32.totalorder %s310_s3, %s310_s3 }
   0xe   :  { %290 = vmatpush3.bf16.msra.mxu1 %v289_v13  ;;  %p317_p3 = por %p316_p2, %p315_p1 }
   0xf   :  { %291 = vmatprep.subr.bf16.mxu1 %v336_v6 }
  0x10   :  { %p318_p4 = pnand %p317_p3, %p311_p0 }
  0x12   :  { %293 = vmatpush3.bf16.msra.mxu1 %v292_v16 }
  0x13   :  { %294 = vmatprep.subr.bf16.mxu1 %v336_v6 }
  0x16   :  { %296 = vmatpush3.bf16.msra.mxu1 %v295_v19 }
  0x17   :  { %297 = vmatprep.subr.bf16.mxu1 %v336_v6 }
  0x1a   :  { %299 = vmatpush3.bf16.msra.mxu1 %v298_v22 }
  0x1b   :  { %300 = vmatprep.subr.bf16.mxu1 %v336_v6 }
  0x1e   :  { %302 = vmatpush3.bf16.msra.mxu1 %v301_v25 }
  0x1f   :  { %303 = vmatprep.subr.bf16.mxu1 %v336_v6 }
  0x22   :  { %305 = vmatpush3.bf16.msra.mxu1 %v304_v28 }
  0xd8   :  { %v105_v30 = vpop.f32.mrb[0].mxu0 }
  0xd9   :  { %v106_v31 = vadd.f32 %v219_v29, %v105_v30  ;;  %v246_v32 = vpop.f32.mrb[1].mxu0 }
  0xdb   :  { %v109_v33 = vmax.f32 %v106_v31, 0.0 }
  0xdd   :  { %280 = vmatmul.mubr.f32.vlgmr.msra.gmra.mrb[0].mxu1 %v109_v33 }
 0x1b0   :  { %v199_v35 = vpop.f32.mrb[0].mxu1 }
 0x1b1   :  { %v200_v36 = vadd.f32 %v222_v34, %v199_v35  ;;  %v281_v37 = vpop.f32.mrb[1].mxu1 }
 0x1b3   :  { %v203_v38 = vmax.f32 %v200_v36, 0.0 }
 0x1b5   :  { %204 = vst [vmem:[#allocation2] sm:$0x3] %v203_v38 }
 0x1b6   :  { %321 = shalt.err (!%p318_p4)
}
 0x1b7   :  { %s322_s7 = scalar_lea.hbm %s445_s5, 32 }
 0x1b8   :  { %p323_p5 = scmp.ne.s32.totalorder %s445_s5, %s322_s7  ;;  %p326_p6 = scmp.lt.u32.totalorder %s322_s7, %s445_s5 }
 0x1ba   :  { %p328_p7 = pnand %p326_p6, %p323_p5 }
 0x1bc   :  { %331 = shalt.err (!%p328_p7)
}
 0x1bd   :  { %214 = dma.vmem_to_hbm [thread:$0]  %s212_s30, 32, %s445_s5, [#allocation3]  }
 0x1be   :  { %332 = dma.done.wait [#allocation3], 32  }
 0x1bf   :  { %333 = vsyncadd [#allocation3], 4294967264 }
 0x1c0   :  { %218 = vsyncpa [#allocation3], 1 }

</bundles_post_ra>
